<compile_context>
chip_gen: v7x
topology: tpu7x:2x2x1
jax: 0.10.0
libtpu: 0.0.40
codegen_flags: <defaults>
</compile_context>

<pallas_src>
import jax
import jax.numpy as jnp
from jax.experimental import pallas as pl
from jax.experimental.pallas import tpu as pltpu

# ----- small, module-consistent shapes --------------------------------------
B, T = 2, 8          # batch, sequence length
L = 4                # num_layers
D = 64               # w2v_dim (small)
OS = 25              # os_dim (as in module)
OS_PAD = 32          # zero-padded os channel width (lane friendly)
H = 32               # hidden_dim (small)
C = 4                # num_classes
EPS = 1e-5           # BatchNorm eps
NT = B * T           # rows per slab

# Row offsets into the packed (512, 32) bf16 weight slab.
OFF_W1 = 0                 # L blocks of (D, H)   -> rows [0, 256)
OFF_WR = OFF_W1 + L * D    # L blocks of (H, H)   -> rows [256, 384)
OFF_WO = OFF_WR + L * H    # (OS_PAD, H)          -> rows [384, 416)
OFF_WFT = OFF_WO + OS_PAD  # (H, H)               -> rows [416, 448)
OFF_WFB = OFF_WFT + H      # (H, H)               -> rows [448, 480)
OFF_WC = OFF_WFB + H       # (H, H) (C real cols) -> rows [480, 512)
W_ROWS = OFF_WC + H        # 512


# ----------------------------- Pallas kernel --------------------------------
def fusion_kernel(w2v_ref, os_ref, w_ref, b_ref, out_ref):
    f32 = jnp.float32
    bf16 = jnp.bfloat16

    # Stage 1 + 2: per-layer conv+BN+ReLU, then the reduce conv, accumulated
    # per layer so the (NT, L*H) concat is never materialized.
    acc = jnp.zeros((NT, H), f32)
    for l in range(L):                                     # L=4, unrolled at trace time
        x_l = w2v_ref[l]                                   # (NT, D) bf16
        w1_l = w_ref[OFF_W1 + l * D:OFF_W1 + (l + 1) * D, :]   # (D, H) bf16
        h_l = jnp.maximum(
            jnp.dot(x_l, w1_l, preferred_element_type=f32)
            + b_ref[l:l + 1, :], 0.0)                      # (NT, H) f32
        wr_l = w_ref[OFF_WR + l * H:OFF_WR + (l + 1) * H, :]   # (H, H) bf16
        acc = acc + jnp.dot(h_l.astype(bf16), wr_l, preferred_element_type=f32)
    w2v_feat = jnp.maximum(acc + b_ref[L:L + 1, :], 0.0)   # (NT, H) f32

    # os_proj (OS zero-padded to 32 input channels).
    wo = w_ref[OFF_WO:OFF_WO + OS_PAD, :]
    os_feat = jnp.maximum(
        jnp.dot(os_ref[...], wo, preferred_element_type=f32)
        + b_ref[L + 1:L + 2, :], 0.0)                      # (NT, H) f32

    # final_conv with split weight halves -> merged concat never materialized.
    wft = w_ref[OFF_WFT:OFF_WFT + H, :]
    wfb = w_ref[OFF_WFB:OFF_WFB + H, :]
    m = jnp.maximum(
        jnp.dot(w2v_feat.astype(bf16), wft, preferred_element_type=f32)
        + jnp.dot(os_feat.astype(bf16), wfb, preferred_element_type=f32)
        + b_ref[L + 2:L + 3, :], 0.0)                      # (NT, H) f32

    # Temporal mean: in-kernel reshape + reduce (no pooling-matrix operand).
    pooled = jnp.sum(m.reshape(B, T, H), axis=1) * (1.0 / T)   # (B, H) f32

    # Classifier (wc padded to 32 output columns; real logits live in [:, :C]).
    wc = w_ref[OFF_WC:OFF_WC + H, :]
    out_ref[...] = (jnp.dot(pooled.astype(bf16), wc, preferred_element_type=f32)
                    + b_ref[L + 3:L + 4, :])               # (B, 32), single store


def fusion_forward(w2v_bltd, os_btc, kparams):
    # (B, L, T, D) -> (L, B, T, D) -> (L, B*T, D): per-layer row slabs, bf16.
    w2v_slab = (jnp.transpose(w2v_bltd, (1, 0, 2, 3))
                .reshape(L, NT, D).astype(jnp.bfloat16))
    # (B, T, OS) -> (B*T, OS_PAD): zero-padded columns, bf16.
    os_slab = jnp.pad(os_btc.reshape(NT, OS),
                      ((0, 0), (0, OS_PAD - OS))).astype(jnp.bfloat16)
    w_slab, b_slab = kparams

    out = pl.pallas_call(
        fusion_kernel,
        out_shape=jax.ShapeDtypeStruct((B, H), jnp.float32),
        in_specs=[pl.BlockSpec(memory_space=pltpu.MemorySpace.VMEM)] * 4,
        out_specs=pl.BlockSpec(memory_space=pltpu.MemorySpace.VMEM),
        cost_estimate=pl.CostEstimate(flops=500_000, transcendentals=0,
                                      bytes_accessed=45_000),
    )(w2v_slab, os_slab, w_slab, b_slab)
    return out[:, :C]                                      # (B, C)


# ------------------------- parameter construction ---------------------------
def init_raw_params(key):
    """PyTorch-style parameter set (conv weight (out,in), bias, BN gamma/beta/mean/var)."""
    ks = iter(jax.random.split(key, 64))
    nrm = lambda shape, s=0.1: jax.random.normal(next(ks), shape, jnp.float32) * s

    def conv_bn(cin, cout):
        return (nrm((cout, cin)), nrm((cout,)),                 # conv w, b
                1.0 + nrm((cout,)), nrm((cout,)),               # gamma, beta
                nrm((cout,)),                                   # running_mean
                1.0 + 0.5 * jax.nn.sigmoid(nrm((cout,), 1.0)))  # running_var > 0

    raw = {
        "layers": [conv_bn(D, H) for _ in range(L)],
        "reduce": conv_bn(L * H, H),
        "os":     conv_bn(OS, H),
        "final":  (nrm((H, 2 * H)), nrm((H,))),
        "cls":    (nrm((C, H)), nrm((C,))),
    }
    return raw


def fold_bn(w, b, gamma, beta, mean, var):
    scale = gamma / jnp.sqrt(var + EPS)
    return w * scale[:, None], (b - mean) * scale + beta


def kernel_params(raw):
    """Pack all folded weights into one bf16 slab and all biases into one f32 slab."""
    w_rows = []
    layer_biases = []
    for (w, b, g, bt, mu, vr) in raw["layers"]:
        wi, bi = fold_bn(w, b, g, bt, mu, vr)               # (H, D), (H,)
        w_rows.append(wi.T)                                 # (D, H)
        layer_biases.append(bi)

    wr_, br_ = fold_bn(*raw["reduce"])                      # (H, L*H), (H,)
    for l in range(L):
        w_rows.append(wr_[:, l * H:(l + 1) * H].T)          # (H, H) per layer block

    wo_, bo_ = fold_bn(*raw["os"])                          # (H, OS), (H,)
    wo_pad = jnp.zeros((OS_PAD, H), jnp.float32).at[:OS, :].set(wo_.T)
    w_rows.append(wo_pad)

    wfin, bfin = raw["final"]                               # (H, 2H), (H,)
    w_rows.append(wfin[:, :H].T)                            # acts on w2v_feat
    w_rows.append(wfin[:, H:].T)                            # acts on os_feat

    wc_, bc_ = raw["cls"]                                   # (C, H), (C,)
    wc_pad = jnp.zeros((H, H), jnp.float32).at[:, :C].set(wc_.T)
    w_rows.append(wc_pad)

    w_slab = jnp.concatenate(w_rows, axis=0).astype(jnp.bfloat16)   # (512, 32)
    assert w_slab.shape == (W_ROWS, H)

    bc_pad = jnp.zeros((H,), jnp.float32).at[:C].set(bc_)
    b_slab = jnp.stack(layer_biases + [br_, bo_, bfin, bc_pad], axis=0)  # (8, 32) f32
    return w_slab, b_slab


# ------------------------- plain-JAX reference -------------------------------
def reference_forward(w2v_bltd, os_btc, raw):
    def conv_bn_relu(x, w, b, g, bt, mu, vr):
        y = jnp.einsum("btc,oc->bto", x, w) + b
        y = (y - mu) / jnp.sqrt(vr + EPS) * g + bt
        return jnp.maximum(y, 0.0)

    hs = [conv_bn_relu(w2v_bltd[:, i], *raw["layers"][i]) for i in range(L)]
    cat = jnp.concatenate(hs, axis=-1)
    w2v_feat = conv_bn_relu(cat, *raw["reduce"])
    os_feat = conv_bn_relu(os_btc, *raw["os"])
    merged = jnp.concatenate([w2v_feat, os_feat], axis=-1)
    wf_, bf_ = raw["final"]
    m = jnp.maximum(jnp.einsum("btc,oc->bto", merged, wf_) + bf_, 0.0)
    pooled = m.mean(axis=1)                                 # mean over time (PyTorch dim=2)
    wc_, bc_ = raw["cls"]
    return pooled @ wc_.T + bc_


# ----------------------------------- main ------------------------------------
if __name__ == "__main__":
    key = jax.random.PRNGKey(0)
    k_w2v, k_os, k_par = jax.random.split(key, 3)

    # PyTorch-convention inputs: w2v_layers (B, L, T, D), os_input (B, T, OS)
    w2v_layers = jax.random.normal(k_w2v, (B, L, T, D), jnp.float32)
    os_input = jax.random.normal(k_os, (B, T, OS), jnp.float32)

    raw = init_raw_params(k_par)
    kparams = kernel_params(raw)

    out = fusion_forward(w2v_layers, os_input, kparams)
    out = jax.block_until_ready(out)

    ref = jax.block_until_ready(reference_forward(w2v_layers, os_input, raw))
    assert out.shape == (B, C), out.shape
    # bf16 matmul operands (f32 accumulation) vs pure-f32 reference.
    assert jnp.allclose(out, ref, rtol=1e-2, atol=2e-2), (out, ref)

    print("KERNEL_OK")
</pallas_src>

<mosaic_0001>
module attributes {stable_mosaic.version = 11 : i64} {
  func.func @fusion_kernel(%arg0: memref<4x16x64xbf16, #tpu.memory_space<vmem>>, %arg1: memref<16x32xbf16, #tpu.memory_space<vmem>>, %arg2: memref<512x32xbf16, #tpu.memory_space<vmem>>, %arg3: memref<8x32xf32, #tpu.memory_space<vmem>>, %arg4: memref<2x32xf32, #tpu.memory_space<vmem>>) attributes {dimension_semantics = [], scalar_prefetch = 0 : i64, scratch_operands = 0 : i64, tpu.core_type = #tpu.core_type<tc>} {
    %cst = arith.constant 0.000000e+00 : f32
    %0 = vector.broadcast %cst : f32 to vector<16x32xf32>
    %c0 = arith.constant 0 : index
    %c0_0 = arith.constant 0 : index
    %c0_1 = arith.constant 0 : index
    %1 = vector.load %arg0[%c0, %c0_0, %c0_1] : memref<4x16x64xbf16, #tpu.memory_space<vmem>>, vector<1x16x64xbf16>
    %2 = vector.shape_cast %1 : vector<1x16x64xbf16> to vector<16x64xbf16>
    %c0_2 = arith.constant 0 : index
    %c0_3 = arith.constant 0 : index
    %3 = vector.load %arg2[%c0_2, %c0_3] : memref<512x32xbf16, #tpu.memory_space<vmem>>, vector<64x32xbf16>
    %cst_4 = arith.constant dense<0.000000e+00> : vector<16x32xf32>
    %4 = tpu.matmul %2, %3, %cst_4 {dimension_numbers = #tpu.dot_dimension_numbers<[1], [0], [0], [1], [0, 0, 1, 1], [], []>} : vector<16x64xbf16>, vector<64x32xbf16>, vector<16x32xf32> -> vector<16x32xf32>
    %c0_5 = arith.constant 0 : index
    %c0_6 = arith.constant 0 : index
    %5 = vector.load %arg3[%c0_5, %c0_6] : memref<8x32xf32, #tpu.memory_space<vmem>>, vector<1x32xf32>
    %6 = vector.broadcast %5 : vector<1x32xf32> to vector<16x32xf32>
    %7 = arith.addf %4, %6 : vector<16x32xf32>
    %cst_7 = arith.constant 0.000000e+00 : f32
    %8 = vector.broadcast %cst_7 : f32 to vector<16x32xf32>
    %9 = arith.maximumf %7, %8 : vector<16x32xf32>
    %c256 = arith.constant 256 : index
    %c0_8 = arith.constant 0 : index
    %10 = vector.load %arg2[%c256, %c0_8] : memref<512x32xbf16, #tpu.memory_space<vmem>>, vector<32x32xbf16>
    %11 = arith.truncf %9 : vector<16x32xf32> to vector<16x32xbf16>
    %cst_9 = arith.constant dense<0.000000e+00> : vector<16x32xf32>
    %12 = tpu.matmul %11, %10, %cst_9 {dimension_numbers = #tpu.dot_dimension_numbers<[1], [0], [0], [1], [0, 0, 1, 1], [], []>} : vector<16x32xbf16>, vector<32x32xbf16>, vector<16x32xf32> -> vector<16x32xf32>
    %13 = arith.addf %0, %12 : vector<16x32xf32>
    %c1 = arith.constant 1 : index
    %c0_10 = arith.constant 0 : index
    %c0_11 = arith.constant 0 : index
    %14 = vector.load %arg0[%c1, %c0_10, %c0_11] : memref<4x16x64xbf16, #tpu.memory_space<vmem>>, vector<1x16x64xbf16>
    %15 = vector.shape_cast %14 : vector<1x16x64xbf16> to vector<16x64xbf16>
    %c64 = arith.constant 64 : index
    %c0_12 = arith.constant 0 : index
    %16 = vector.load %arg2[%c64, %c0_12] : memref<512x32xbf16, #tpu.memory_space<vmem>>, vector<64x32xbf16>
    %cst_13 = arith.constant dense<0.000000e+00> : vector<16x32xf32>
    %17 = tpu.matmul %15, %16, %cst_13 {dimension_numbers = #tpu.dot_dimension_numbers<[1], [0], [0], [1], [0, 0, 1, 1], [], []>} : vector<16x64xbf16>, vector<64x32xbf16>, vector<16x32xf32> -> vector<16x32xf32>
    %c1_14 = arith.constant 1 : index
    %c0_15 = arith.constant 0 : index
    %18 = vector.load %arg3[%c1_14, %c0_15] : memref<8x32xf32, #tpu.memory_space<vmem>>, vector<1x32xf32>
    %19 = vector.broadcast %18 : vector<1x32xf32> to vector<16x32xf32>
    %20 = arith.addf %17, %19 : vector<16x32xf32>
    %cst_16 = arith.constant 0.000000e+00 : f32
    %21 = vector.broadcast %cst_16 : f32 to vector<16x32xf32>
    %22 = arith.maximumf %20, %21 : vector<16x32xf32>
    %c288 = arith.constant 288 : index
    %c0_17 = arith.constant 0 : index
    %23 = vector.load %arg2[%c288, %c0_17] : memref<512x32xbf16, #tpu.memory_space<vmem>>, vector<32x32xbf16>
    %24 = arith.truncf %22 : vector<16x32xf32> to vector<16x32xbf16>
    %cst_18 = arith.constant dense<0.000000e+00> : vector<16x32xf32>
    %25 = tpu.matmul %24, %23, %cst_18 {dimension_numbers = #tpu.dot_dimension_numbers<[1], [0], [0], [1], [0, 0, 1, 1], [], []>} : vector<16x32xbf16>, vector<32x32xbf16>, vector<16x32xf32> -> vector<16x32xf32>
    %26 = arith.addf %13, %25 : vector<16x32xf32>
    %c2 = arith.constant 2 : index
    %c0_19 = arith.constant 0 : index
    %c0_20 = arith.constant 0 : index
    %27 = vector.load %arg0[%c2, %c0_19, %c0_20] : memref<4x16x64xbf16, #tpu.memory_space<vmem>>, vector<1x16x64xbf16>
    %28 = vector.shape_cast %27 : vector<1x16x64xbf16> to vector<16x64xbf16>
    %c128 = arith.constant 128 : index
    %c0_21 = arith.constant 0 : index
    %29 = vector.load %arg2[%c128, %c0_21] : memref<512x32xbf16, #tpu.memory_space<vmem>>, vector<64x32xbf16>
    %cst_22 = arith.constant dense<0.000000e+00> : vector<16x32xf32>
    %30 = tpu.matmul %28, %29, %cst_22 {dimension_numbers = #tpu.dot_dimension_numbers<[1], [0], [0], [1], [0, 0, 1, 1], [], []>} : vector<16x64xbf16>, vector<64x32xbf16>, vector<16x32xf32> -> vector<16x32xf32>
    %c2_23 = arith.constant 2 : index
    %c0_24 = arith.constant 0 : index
    %31 = vector.load %arg3[%c2_23, %c0_24] : memref<8x32xf32, #tpu.memory_space<vmem>>, vector<1x32xf32>
    %32 = vector.broadcast %31 : vector<1x32xf32> to vector<16x32xf32>
    %33 = arith.addf %30, %32 : vector<16x32xf32>
    %cst_25 = arith.constant 0.000000e+00 : f32
    %34 = vector.broadcast %cst_25 : f32 to vector<16x32xf32>
    %35 = arith.maximumf %33, %34 : vector<16x32xf32>
    %c320 = arith.constant 320 : index
    %c0_26 = arith.constant 0 : index
    %36 = vector.load %arg2[%c320, %c0_26] : memref<512x32xbf16, #tpu.memory_space<vmem>>, vector<32x32xbf16>
    %37 = arith.truncf %35 : vector<16x32xf32> to vector<16x32xbf16>
    %cst_27 = arith.constant dense<0.000000e+00> : vector<16x32xf32>
    %38 = tpu.matmul %37, %36, %cst_27 {dimension_numbers = #tpu.dot_dimension_numbers<[1], [0], [0], [1], [0, 0, 1, 1], [], []>} : vector<16x32xbf16>, vector<32x32xbf16>, vector<16x32xf32> -> vector<16x32xf32>
    %39 = arith.addf %26, %38 : vector<16x32xf32>
    %c3 = arith.constant 3 : index
    %c0_28 = arith.constant 0 : index
    %c0_29 = arith.constant 0 : index
    %40 = vector.load %arg0[%c3, %c0_28, %c0_29] : memref<4x16x64xbf16, #tpu.memory_space<vmem>>, vector<1x16x64xbf16>
    %41 = vector.shape_cast %40 : vector<1x16x64xbf16> to vector<16x64xbf16>
    %c192 = arith.constant 192 : index
    %c0_30 = arith.constant 0 : index
    %42 = vector.load %arg2[%c192, %c0_30] : memref<512x32xbf16, #tpu.memory_space<vmem>>, vector<64x32xbf16>
    %cst_31 = arith.constant dense<0.000000e+00> : vector<16x32xf32>
    %43 = tpu.matmul %41, %42, %cst_31 {dimension_numbers = #tpu.dot_dimension_numbers<[1], [0], [0], [1], [0, 0, 1, 1], [], []>} : vector<16x64xbf16>, vector<64x32xbf16>, vector<16x32xf32> -> vector<16x32xf32>
    %c3_32 = arith.constant 3 : index
    %c0_33 = arith.constant 0 : index
    %44 = vector.load %arg3[%c3_32, %c0_33] : memref<8x32xf32, #tpu.memory_space<vmem>>, vector<1x32xf32>
    %45 = vector.broadcast %44 : vector<1x32xf32> to vector<16x32xf32>
    %46 = arith.addf %43, %45 : vector<16x32xf32>
    %cst_34 = arith.constant 0.000000e+00 : f32
    %47 = vector.broadcast %cst_34 : f32 to vector<16x32xf32>
    %48 = arith.maximumf %46, %47 : vector<16x32xf32>
    %c352 = arith.constant 352 : index
    %c0_35 = arith.constant 0 : index
    %49 = vector.load %arg2[%c352, %c0_35] : memref<512x32xbf16, #tpu.memory_space<vmem>>, vector<32x32xbf16>
    %50 = arith.truncf %48 : vector<16x32xf32> to vector<16x32xbf16>
    %cst_36 = arith.constant dense<0.000000e+00> : vector<16x32xf32>
    %51 = tpu.matmul %50, %49, %cst_36 {dimension_numbers = #tpu.dot_dimension_numbers<[1], [0], [0], [1], [0, 0, 1, 1], [], []>} : vector<16x32xbf16>, vector<32x32xbf16>, vector<16x32xf32> -> vector<16x32xf32>
    %52 = arith.addf %39, %51 : vector<16x32xf32>
    %c4 = arith.constant 4 : index
    %c0_37 = arith.constant 0 : index
    %53 = vector.load %arg3[%c4, %c0_37] : memref<8x32xf32, #tpu.memory_space<vmem>>, vector<1x32xf32>
    %54 = vector.broadcast %53 : vector<1x32xf32> to vector<16x32xf32>
    %55 = arith.addf %52, %54 : vector<16x32xf32>
    %cst_38 = arith.constant 0.000000e+00 : f32
    %56 = vector.broadcast %cst_38 : f32 to vector<16x32xf32>
    %57 = arith.maximumf %55, %56 : vector<16x32xf32>
    %c384 = arith.constant 384 : index
    %c0_39 = arith.constant 0 : index
    %58 = vector.load %arg2[%c384, %c0_39] : memref<512x32xbf16, #tpu.memory_space<vmem>>, vector<32x32xbf16>
    %c0_40 = arith.constant 0 : index
    %c0_41 = arith.constant 0 : index
    %59 = vector.load %arg1[%c0_40, %c0_41] : memref<16x32xbf16, #tpu.memory_space<vmem>>, vector<16x32xbf16>
    %cst_42 = arith.constant dense<0.000000e+00> : vector<16x32xf32>
    %60 = tpu.matmul %59, %58, %cst_42 {dimension_numbers = #tpu.dot_dimension_numbers<[1], [0], [0], [1], [0, 0, 1, 1], [], []>} : vector<16x32xbf16>, vector<32x32xbf16>, vector<16x32xf32> -> vector<16x32xf32>
    %c5 = arith.constant 5 : index
    %c0_43 = arith.constant 0 : index
    %61 = vector.load %arg3[%c5, %c0_43] : memref<8x32xf32, #tpu.memory_space<vmem>>, vector<1x32xf32>
    %62 = vector.broadcast %61 : vector<1x32xf32> to vector<16x32xf32>
    %63 = arith.addf %60, %62 : vector<16x32xf32>
    %cst_44 = arith.constant 0.000000e+00 : f32
    %64 = vector.broadcast %cst_44 : f32 to vector<16x32xf32>
    %65 = arith.maximumf %63, %64 : vector<16x32xf32>
    %c416 = arith.constant 416 : index
    %c0_45 = arith.constant 0 : index
    %66 = vector.load %arg2[%c416, %c0_45] : memref<512x32xbf16, #tpu.memory_space<vmem>>, vector<32x32xbf16>
    %c448 = arith.constant 448 : index
    %c0_46 = arith.constant 0 : index
    %67 = vector.load %arg2[%c448, %c0_46] : memref<512x32xbf16, #tpu.memory_space<vmem>>, vector<32x32xbf16>
    %68 = arith.truncf %57 : vector<16x32xf32> to vector<16x32xbf16>
    %cst_47 = arith.constant dense<0.000000e+00> : vector<16x32xf32>
    %69 = tpu.matmul %68, %66, %cst_47 {dimension_numbers = #tpu.dot_dimension_numbers<[1], [0], [0], [1], [0, 0, 1, 1], [], []>} : vector<16x32xbf16>, vector<32x32xbf16>, vector<16x32xf32> -> vector<16x32xf32>
    %70 = arith.truncf %65 : vector<16x32xf32> to vector<16x32xbf16>
    %cst_48 = arith.constant dense<0.000000e+00> : vector<16x32xf32>
    %71 = tpu.matmul %70, %67, %cst_48 {dimension_numbers = #tpu.dot_dimension_numbers<[1], [0], [0], [1], [0, 0, 1, 1], [], []>} : vector<16x32xbf16>, vector<32x32xbf16>, vector<16x32xf32> -> vector<16x32xf32>
    %72 = arith.addf %69, %71 : vector<16x32xf32>
    %c6 = arith.constant 6 : index
    %c0_49 = arith.constant 0 : index
    %73 = vector.load %arg3[%c6, %c0_49] : memref<8x32xf32, #tpu.memory_space<vmem>>, vector<1x32xf32>
    %74 = vector.broadcast %73 : vector<1x32xf32> to vector<16x32xf32>
    %75 = arith.addf %72, %74 : vector<16x32xf32>
    %cst_50 = arith.constant 0.000000e+00 : f32
    %76 = vector.broadcast %cst_50 : f32 to vector<16x32xf32>
    %77 = arith.maximumf %75, %76 : vector<16x32xf32>
    %78 = vector.shape_cast %77 : vector<16x32xf32> to vector<2x8x32xf32>
    %cst_51 = arith.constant dense<0.000000e+00> : vector<2x32xf32>
    %79 = vector.multi_reduction <add>, %78, %cst_51 [1] : vector<2x8x32xf32> to vector<2x32xf32>
    %cst_52 = arith.constant 1.250000e-01 : f32
    %80 = vector.broadcast %cst_52 : f32 to vector<2x32xf32>
    %81 = arith.mulf %79, %80 : vector<2x32xf32>
    %c480 = arith.constant 480 : index
    %c0_53 = arith.constant 0 : index
    %82 = vector.load %arg2[%c480, %c0_53] : memref<512x32xbf16, #tpu.memory_space<vmem>>, vector<32x32xbf16>
    %83 = arith.truncf %81 : vector<2x32xf32> to vector<2x32xbf16>
    %cst_54 = arith.constant dense<0.000000e+00> : vector<2x32xf32>
    %84 = tpu.matmul %83, %82, %cst_54 {dimension_numbers = #tpu.dot_dimension_numbers<[1], [0], [0], [1], [0, 0, 1, 1], [], []>} : vector<2x32xbf16>, vector<32x32xbf16>, vector<2x32xf32> -> vector<2x32xf32>
    %c7 = arith.constant 7 : index
    %c0_55 = arith.constant 0 : index
    %85 = vector.load %arg3[%c7, %c0_55] : memref<8x32xf32, #tpu.memory_space<vmem>>, vector<1x32xf32>
    %86 = vector.broadcast %85 : vector<1x32xf32> to vector<2x32xf32>
    %87 = arith.addf %84, %86 : vector<2x32xf32>
    %c0_56 = arith.constant 0 : index
    %c0_57 = arith.constant 0 : index
    %88 = vector.load %arg4[%c0_56, %c0_57] : memref<2x32xf32, #tpu.memory_space<vmem>>, vector<2x32xf32>
    tpu.vector_store %arg4[%c0_56, %c0_57], %87 {strides = array<i32>} : memref<2x32xf32, #tpu.memory_space<vmem>>, vector<2x32xf32>,
    return
  }
}

</mosaic_0001>

<bundles_post_ra>
// kernel: tpu_custom_call.1
= control target key start
LH: loop header
LB: loop body
LE: loop exit
PB: predicated region body
PF: predicated region fallthrough
CT: control target
= control target key end

     0   :  { %v1234_v1 = vmov 0.0   ;;  %vm1235_vm0 = vmmov 0   ;;  %vm63_vm1 = vcmask 523264   ;;  %s1479_s0 = inlined_call_operand.vmem [shape: bf16[4,16,64], index: 0, kind: input, shape index: {}]   ;;  %s1480_s1 = inlined_call_operand.vmem [shape: bf16[16,32], index: 1, kind: input, shape index: {}]   ;;  %s1481_s2 = inlined_call_operand.vmem [shape: bf16[512,32], index: 2, kind: input, shape index: {}]   ;;  %s1482_s3 = inlined_call_operand.vmem [shape: f32[8,32], index: 3, kind: input, shape index: {}]   ;;  %s1483_s4 = inlined_call_operand.hbm [shape: f32[2,32], index: 4, kind: output, shape index: {}]  }
   0x1   :  { %v1173_v0 = vld [vmem:[%s1481_s2] sm:$0xff]   ;;  %1058 = vmatprep.subr.bf16.mxu0 %v1234_v1  ;;  %1070 = vmatprep.subr.bf16.mxu1 %v1234_v1  ;;  %v1175_v3 = vld [vmem:[%s1481_s2 + $0x8] sm:$0xff]   ;;  %v1177_v5 = vld [vmem:[%s1481_s2 + $0x10] sm:$0xff]  }
   0x2   :  { %v1174_v2 = vld [vmem:[%s1481_s2 + $0x20] sm:$0xff]   ;;  %1059 = vmatpush3.bf16.msra.mxu0 %v1173_v0  ;;  %1066 = vmatprep.mubr.msk.bf16.mxu0 %vm1235_vm0, %v1234_v1  ;;  %v1176_v4 = vld [vmem:[%s1481_s2 + $0x28] sm:$0xff]   ;;  %v1178_v6 = vld [vmem:[%s1481_s2 + $0x30] sm:$0xff]  }
   0x3   :  { %1071 = vmatpush3.bf16.msra.mxu1 %v1174_v2  ;;  %1060 = vmatprep.subr.bf16.mxu0 %v1234_v1  ;;  %v1179_v7 = vld [vmem:[%s1481_s2 + $0x18] sm:$0xff]   ;;  %v1181_v9 = vld [vmem:[%s1479_s0] sm:$0xff]   ;;  %v1182_v10 = vld [vmem:[%s1479_s0 + $0x8] sm:$0xff]  }
   0x4   :  { %1072 = vmatprep.subr.bf16.mxu1 %v1234_v1  ;;  %1078 = vmatprep.mubr.msk.bf16.mxu1 %vm1235_vm0, %v1234_v1  ;;  %v1180_v8 = vld [vmem:[%s1481_s2 + $0x38] sm:$0xff]  }
   0x6   :  { %1061 = vmatpush3.bf16.msra.mxu0 %v1175_v3 }
   0x7   :  { %1073 = vmatpush3.bf16.msra.mxu1 %v1176_v4  ;;  %1062 = vmatprep.subr.bf16.mxu0 %v1234_v1 }
   0x8   :  { %1074 = vmatprep.subr.bf16.mxu1 %v1234_v1 }
   0xa   :  { %1063 = vmatpush3.bf16.msra.mxu0 %v1177_v5 }
   0xb   :  { %1075 = vmatpush3.bf16.msra.mxu1 %v1178_v6  ;;  %1064 = vmatprep.subr.bf16.mxu0 %v1234_v1 }
   0xc   :  { %1076 = vmatprep.subr.bf16.mxu1 %v1234_v1 }
   0xe   :  { %1065 = vmatpush3.bf16.msra.mxu0 %v1179_v7 }
   0xf   :  { %1077 = vmatpush3.bf16.msra.mxu1 %v1180_v8  ;;  %1082 = vmatprep.subr.bf16.mxu0 %v1234_v1 }
  0x10   :  { %1090 = vmatprep.subr.bf16.mxu1 %v1234_v1 }
  0x11   :  { %1067 = vmatmul.mubr.msk.bf16.vlgmr.msra.gmra.mrb[0].mxu0 %vm63_vm1, %v1181_v9 }
  0x12   :  { %1079 = vmatmul.mubr.msk.bf16.vlgmr.msra.gmra.mrb[0].mxu1 %vm63_vm1, %v1182_v10  ;;  %1086 = vmatprep.mubr.msk.bf16.mxu0 %vm1235_vm0, %v1234_v1 }
  0x13   :  { %1094 = vmatprep.mubr.msk.bf16.mxu1 %vm1235_vm0, %v1234_v1 }
  0x14   :  { %9 = vsyncpa [#allocation3], 0  ;;  %v1183_v11 = vld [vmem:[%s1481_s2 + $0x90] sm:$0xff]   ;;  %v1184_v12 = vld [vmem:[%s1481_s2 + $0x80] sm:$0xff]   ;;  %vm223_vm2 = vcmask 261120   ;;  %vm877_vm3 = vcmask 1041409  }
  0x15   :  { %1083 = vmatpush3.bf16.msra.mxu0 %v1183_v11  ;;  %1091 = vmatpush3.bf16.msra.mxu1 %v1184_v12  ;;  %v1185_v13 = vld [vmem:[%s1481_s2 + $0x98] sm:$0xff]   ;;  %v1186_v14 = vld [vmem:[%s1481_s2 + $0x88] sm:$0xff]   ;;  %v951_v15 = vld [vmem:[%s1482_s3] ss:$0 sm:$0xff]  ;;  %s1236_s24 = smov [#allocation2]   ;;  %vm935_vm4 = vcmask 254976  }
  0x16   :  { %1084 = vmatprep.subr.bf16.mxu0 %v1234_v1  ;;  %1092 = vmatprep.subr.bf16.mxu1 %v1234_v1  ;;  %v960_v16 = vld [vmem:[%s1482_s3 + $0x1] ss:$0 sm:$0xff]  ;;  %v1188_v36 = vld [vmem:[%s1481_s2 + $0x48] sm:$0xff]   ;;  %v1189_v37 = vld [vmem:[%s1481_s2 + $0x50] sm:$0xff]  }
  0x17   :  { %v1187_v34 = vld [vmem:[%s1481_s2 + $0x40] sm:$0xff]   ;;  %v1190_v38 = vld [vmem:[%s1481_s2 + $0x58] sm:$0xff]   ;;  %v1191_v39 = vld [vmem:[%s1479_s0 + $0x10] sm:$0xff]  }
  0x18   :  { %v1192_v40 = vld [vmem:[%s1481_s2 + $0xa0] sm:$0xff]   ;;  %v1193_v41 = vld [vmem:[%s1481_s2 + $0xa8] sm:$0xff]   ;;  %v1196_v0 = vld [vmem:[%s1481_s2 + $0x70] sm:$0xff]  }
  0x19   :  { %1085 = vmatpush3.bf16.msra.mxu0 %v1185_v13  ;;  %1093 = vmatpush3.bf16.msra.mxu1 %v1186_v14  ;;  %v975_v52 = vld [vmem:[%s1482_s3 + $0x2] ss:$0 sm:$0xff]  ;;  %v1195_v63 = vld [vmem:[%s1481_s2 + $0x68] sm:$0xff]   ;;  %v1197_v2 = vld [vmem:[%s1481_s2 + $0x78] sm:$0xff]  }
  0x1a   :  { %1098 = vmatprep.subr.bf16.mxu0 %v1234_v1  ;;  %1110 = vmatprep.subr.bf16.mxu1 %v1234_v1  ;;  %v1194_v61 = vld [vmem:[%s1481_s2 + $0x60] sm:$0xff]   ;;  %v1198_v3 = vld [vmem:[%s1479_s0 + $0x18] sm:$0xff]   ;;  %v1199_v4 = vld [vmem:[%s1481_s2 + $0xb0] sm:$0xff]   ;;  %s943_s0 = sshll.u32 %s1236_s24, 4  ;;  %s944_s0 = int_to_ptr.vmem [resolvable:$true] %s943_s0 }
  0x1b   :  { %v1200_v5 = vld [vmem:[%s1481_s2 + $0xb8] sm:$0xff]   ;;  %v987_v12 = vld [vmem:[%s1482_s3 + $0x3] ss:$0 sm:$0xff]  ;;  %s1210_s25 = scalar_lea.vmem %s944_s0, 32  ;;  %p1215_p1 = scmp.lt.s32.totalorder %s944_s0, %s944_s0 }
  0x1c   :  { %p1211_p0 = scmp.ne.s32.totalorder %s944_s0, %s1210_s25  ;;  %p1216_p2 = scmp.lt.s32.totalorder %s1210_s25, %s1210_s25 }
  0x1e   :  { %p1217_p3 = por %p1216_p2, %p1215_p1 }
  0x20   :  { %p1218_p4 = pnand %p1217_p3, %p1211_p0 }
  0xe4   :  { %v101_v17 = vpop.f32.mrb[0].mxu0 }
  0xe5   :  { %v102_v18 = vadd.f32 %v951_v15, %v101_v17  ;;  %v197_v19 = vpop.f32.mrb[0].mxu1  ;;  %v1068_v20 = vpop.f32.mrb[1].mxu0 }
  0xe6   :  { %v198_v21 = vadd.f32 %v960_v16, %v197_v19  ;;  %v1080_v22 = vpop.f32.mrb[1].mxu1  ;;  %v104_v23 = vpop.f32.mrb[2].mxu0 }
  0xe7   :  { %v108_v24 = vmax.f32 %v102_v18, 0.0  ;;  %v105_v25 = vadd.f32 %v951_v15, %v104_v23  ;;  %v200_v26 = vpop.f32.mrb[2].mxu1  ;;  %v1069_v27 = vpop.f32.mrb[3].mxu0  ;;  %v1202_v23 = vld [vmem:[%s1481_s2 + $0xc8] sm:$0xff]  }
  0xe8   :  { %v201_v28 = vadd.f32 %v960_v16, %v200_v26  ;;  %v1081_v29 = vpop.f32.mrb[3].mxu1  ;;  %v204_v31 = vmax.f32 %v198_v21, 0.0  ;;  %v1201_v21 = vld [vmem:[%s1481_s2 + $0xc0] sm:$0xff]   ;;  %v1205_v26 = vld [vmem:[%s1481_s2 + $0xd8] sm:$0xff]  }
  0xe9   :  { %v109_v30 = vmax.f32 %v105_v25, 0.0  ;;  %v1204_v25 = vld [vmem:[%s1481_s2 + $0xd0] sm:$0xff]   ;;  %v1206_v27 = vld [vmem:[%s1481_s2 + $0xe0] sm:$0xff]  }
  0xea   :  { %v205_v32 = vmax.f32 %v201_v28, 0.0  ;;  %v1207_v28 = vld [vmem:[%s1481_s2 + $0xe8] sm:$0xff]  }
  0xeb   :  { %v114_v33 = vpack.c.bf16 %v109_v30, %v108_v24  ;;  %v1203_v24 = vld [vmem:[%s1480_s1] sm:$0xff]  }
  0xec   :  { %v210_v35 = vpack.c.bf16 %v205_v32, %v204_v31  ;;  %v997_v30 = vld [vmem:[%s1482_s3 + $0x4] ss:$0 sm:$0xff] }
  0xed   :  { %1095 = vmatmul.mubr.msk.bf16.vlgmr.msra.gmra.mrb[4].mxu1 %vm223_vm2, %v114_v33 }
  0xee   :  { %1087 = vmatmul.mubr.msk.bf16.vlgmr.msra.gmra.mrb[4].mxu0 %vm223_vm2, %v210_v35  ;;  %1114 = vmatprep.mubr.msk.bf16.mxu1 %vm1235_vm0, %v1234_v1 }
  0xef   :  { %1099 = vmatpush3.bf16.msra.mxu0 %v1187_v34  ;;  %1106 = vmatprep.mubr.msk.bf16.mxu0 %vm1235_vm0, %v1234_v1 }
  0xf0   :  { %1100 = vmatprep.subr.bf16.mxu0 %v1234_v1  ;;  %1111 = vmatpush3.bf16.msra.mxu1 %v1192_v40 }
  0xf1   :  { %1112 = vmatprep.subr.bf16.mxu1 %v1234_v1 }
  0xf3   :  { %1101 = vmatpush3.bf16.msra.mxu0 %v1188_v36 }
  0xf4   :  { %1102 = vmatprep.subr.bf16.mxu0 %v1234_v1  ;;  %1113 = vmatpush3.bf16.msra.mxu1 %v1193_v41 }
  0xf5   :  { %1118 = vmatprep.subr.bf16.mxu1 %v1234_v1 }
  0xf7   :  { %1103 = vmatpush3.bf16.msra.mxu0 %v1189_v37 }
  0xf8   :  { %1104 = vmatprep.subr.bf16.mxu0 %v1234_v1 }
  0xfb   :  { %1105 = vmatpush3.bf16.msra.mxu0 %v1190_v38  ;;  %v998_v38 = vld [vmem:[%s1482_s3 + $0x5] ss:$0 sm:$0xff] }
  0xfc   :  { %1130 = vmatprep.subr.bf16.mxu0 %v1234_v1 }
  0xfe   :  { %1107 = vmatmul.mubr.msk.bf16.vlgmr.msra.gmra.mrb[8].mxu0 %vm63_vm1, %v1191_v39 }
  0xff   :  { %1134 = vmatprep.mubr.msk.bf16.mxu0 %vm1235_vm0, %v1234_v1  ;;  %1131 = vmatpush3.bf16.msra.mxu0 %v1199_v4 }
 0x100   :  { %1132 = vmatprep.subr.bf16.mxu0 %v1234_v1 }
 0x103   :  { %1133 = vmatpush3.bf16.msra.mxu0 %v1200_v5 }
 0x104   :  { %1138 = vmatprep.subr.bf16.mxu0 %v1234_v1 }
 0x1c0   :  { %v317_v42 = vpop.f32.mrb[4].mxu1 }
 0x1c1   :  { %v261_v43 = vpop.f32.mrb[4].mxu0  ;;  %v1096_v44 = vpop.f32.mrb[5].mxu1 }
 0x1c2   :  { %v318_v45 = vadd.f32 %v317_v42, %v261_v43  ;;  %v1088_v46 = vpop.f32.mrb[5].mxu0  ;;  %v320_v47 = vpop.f32.mrb[6].mxu1 }
 0x1c3   :  { %v264_v48 = vpop.f32.mrb[6].mxu0  ;;  %v1097_v49 = vpop.f32.mrb[7].mxu1 }
 0x1c4   :  { %v321_v50 = vadd.f32 %v320_v47, %v264_v48  ;;  %v1089_v51 = vpop.f32.mrb[7].mxu0 }
 0x1c5   :  { %v1208_v51 = vld [vmem:[%s1481_s2 + $0xf0] sm:$0xff]  }
 0x1d1   :  { %v406_v53 = vpop.f32.mrb[8].mxu0 }
 0x1d2   :  { %v407_v54 = vadd.f32 %v975_v52, %v406_v53  ;;  %v1108_v55 = vpop.f32.mrb[9].mxu0 }
 0x1d3   :  { %v409_v56 = vpop.f32.mrb[10].mxu0 }
 0x1d4   :  { %v410_v57 = vadd.f32 %v975_v52, %v409_v56  ;;  %v1109_v58 = vpop.f32.mrb[11].mxu0  ;;  %v413_v59 = vmax.f32 %v407_v54, 0.0  ;;  %v1209_v52 = vld [vmem:[%s1481_s2 + $0xf8] sm:$0xff]  }
 0x1d5   :  { %v1009_v58 = vld [vmem:[%s1482_s3 + $0x6] ss:$0 sm:$0xff] }
 0x1d6   :  { %v414_v60 = vmax.f32 %v410_v57, 0.0 }
 0x1d8   :  { %v419_v62 = vpack.c.bf16 %v414_v60, %v413_v59 }
 0x1da   :  { %1115 = vmatmul.mubr.msk.bf16.vlgmr.msra.gmra.mrb[8].mxu1 %vm223_vm2, %v419_v62 }
 0x1db   :  { %1119 = vmatpush3.bf16.msra.mxu1 %v1194_v61  ;;  %1126 = vmatprep.mubr.msk.bf16.mxu1 %vm1235_vm0, %v1234_v1 }
 0x1dc   :  { %1120 = vmatprep.subr.bf16.mxu1 %v1234_v1 }
 0x1df   :  { %1121 = vmatpush3.bf16.msra.mxu1 %v1195_v63 }
 0x1e0   :  { %1122 = vmatprep.subr.bf16.mxu1 %v1234_v1 }
 0x1e3   :  { %1123 = vmatpush3.bf16.msra.mxu1 %v1196_v0 }
 0x1e4   :  { %1124 = vmatprep.subr.bf16.mxu1 %v1234_v1 }
 0x1e7   :  { %1125 = vmatpush3.bf16.msra.mxu1 %v1197_v2 }
 0x1e8   :  { %1146 = vmatprep.subr.bf16.mxu1 %v1234_v1 }
 0x1ea   :  { %1127 = vmatmul.mubr.msk.bf16.vlgmr.msra.gmra.mrb[12].mxu1 %vm63_vm1, %v1198_v3 }
 0x1eb   :  { %1150 = vmatprep.mubr.msk.bf16.mxu1 %vm1235_vm0, %v1234_v1  ;;  %1147 = vmatpush3.bf16.msra.mxu1 %v1206_v27 }
 0x1ec   :  { %1148 = vmatprep.subr.bf16.mxu1 %v1234_v1 }
 0x1ef   :  { %1149 = vmatpush3.bf16.msra.mxu1 %v1207_v28 }
 0x1f0   :  { %1162 = vmatprep.subr.bf16.mxu1 %v1234_v1 }
 0x2ad   :  { %v469_v6 = vpop.f32.mrb[8].mxu1 }
 0x2ae   :  { %v476_v7 = vadd.f32 %v469_v6, %v318_v45  ;;  %v1116_v8 = vpop.f32.mrb[9].mxu1 }
 0x2af   :  { %v472_v9 = vpop.f32.mrb[10].mxu1 }
 0x2b0   :  { %v477_v10 = vadd.f32 %v472_v9, %v321_v50  ;;  %v1117_v11 = vpop.f32.mrb[11].mxu1 }
 0x2bd   :  { %v560_v13 = vpop.f32.mrb[12].mxu1 }
 0x2be   :  { %v561_v14 = vadd.f32 %v987_v12, %v560_v13  ;;  %v1128_v15 = vpop.f32.mrb[13].mxu1 }
 0x2bf   :  { %v563_v16 = vpop.f32.mrb[14].mxu1 }
 0x2c0   :  { %v564_v17 = vadd.f32 %v987_v12, %v563_v16  ;;  %v1129_v18 = vpop.f32.mrb[15].mxu1  ;;  %v567_v19 = vmax.f32 %v561_v14, 0.0 }
 0x2c2   :  { %v568_v20 = vmax.f32 %v564_v17, 0.0 }
 0x2c4   :  { %v573_v22 = vpack.c.bf16 %v568_v20, %v567_v19 }
 0x2c6   :  { %1135 = vmatmul.mubr.msk.bf16.vlgmr.msra.gmra.mrb[12].mxu0 %vm223_vm2, %v573_v22 }
 0x2c7   :  { %1139 = vmatpush3.bf16.msra.mxu0 %v1201_v21  ;;  %1142 = vmatprep.mubr.msk.bf16.mxu0 %vm1235_vm0, %v1234_v1 }
 0x2c8   :  { %1140 = vmatprep.subr.bf16.mxu0 %v1234_v1 }
 0x2cb   :  { %1141 = vmatpush3.bf16.msra.mxu0 %v1202_v23 }
 0x2cc   :  { %1154 = vmatprep.subr.bf16.mxu0 %v1234_v1 }
 0x2ce   :  { %1143 = vmatmul.mubr.msk.bf16.vlgmr.msra.gmra.mrb[16].mxu0 %vm223_vm2, %v1203_v24 }
 0x2cf   :  { %1158 = vmatprep.mubr.msk.bf16.mxu0 %vm1235_vm0, %v1234_v1  ;;  %1155 = vmatpush3.bf16.msra.mxu0 %v1204_v25 }
 0x2d0   :  { %1156 = vmatprep.subr.bf16.mxu0 %v1234_v1 }
 0x2d3   :  { %1157 = vmatpush3.bf16.msra.mxu0 %v1205_v26  ;;  %v1010_v26 = vld [vmem:[%s1482_s3 + $0x7] ss:$0 sm:$0xff] }
 0x399   :  { %v623_v29 = vpop.f32.mrb[12].mxu0 }
 0x39a   :  { %v630_v31 = vadd.f32 %v623_v29, %v476_v7  ;;  %v1136_v32 = vpop.f32.mrb[13].mxu0 }
 0x39b   :  { %v626_v33 = vpop.f32.mrb[14].mxu0 }
 0x39c   :  { %v637_v34 = vadd.f32 %v997_v30, %v630_v31  ;;  %v631_v35 = vadd.f32 %v626_v33, %v477_v10  ;;  %v1137_v36 = vpop.f32.mrb[15].mxu0 }
 0x39e   :  { %v638_v37 = vadd.f32 %v997_v30, %v631_v35  ;;  %v639_v39 = vmax.f32 %v637_v34, 0.0 }
 0x3a0   :  { %v640_v40 = vmax.f32 %v638_v37, 0.0 }
 0x3a1   :  { %v706_v41 = vpop.f32.mrb[16].mxu0 }
 0x3a2   :  { %v723_v42 = vpack.c.bf16 %v640_v40, %v639_v39  ;;  %v707_v43 = vadd.f32 %v998_v38, %v706_v41  ;;  %v1144_v44 = vpop.f32.mrb[17].mxu0 }
 0x3a3   :  { %v709_v45 = vpop.f32.mrb[18].mxu0 }
 0x3a4   :  { %v710_v46 = vadd.f32 %v998_v38, %v709_v45  ;;  %v1145_v47 = vpop.f32.mrb[19].mxu0  ;;  %1159 = vmatmul.mubr.msk.bf16.vlgmr.msra.gmra.mrb[20].mxu0 %vm223_vm2, %v723_v42  ;;  %v713_v48 = vmax.f32 %v707_v43, 0.0 }
 0x3a6   :  { %v714_v49 = vmax.f32 %v710_v46, 0.0 }
 0x3a8   :  { %v724_v50 = vpack.c.bf16 %v714_v49, %v713_v48 }
 0x3aa   :  { %1151 = vmatmul.mubr.msk.bf16.vlgmr.msra.gmra.mrb[16].mxu1 %vm223_vm2, %v724_v50 }
 0x3ab   :  { %1166 = vmatprep.mubr.msk.bf16.mxu1 %vm1235_vm0, %v1234_v1  ;;  %1163 = vmatpush3.bf16.msra.mxu1 %v1208_v51 }
 0x3ac   :  { %1164 = vmatprep.subr.bf16.mxu1 %v1234_v1 }
 0x3af   :  { %1165 = vmatpush3.bf16.msra.mxu1 %v1209_v52 }
 0x477   :  { %v830_v53 = vpop.f32.mrb[20].mxu0 }
 0x478   :  { %v1160_v54 = vpop.f32.mrb[21].mxu0 }
 0x479   :  { %v833_v55 = vpop.f32.mrb[22].mxu0 }
 0x47a   :  { %v1161_v56 = vpop.f32.mrb[23].mxu0 }
 0x47d   :  { %v774_v57 = vpop.f32.mrb[16].mxu1 }
 0x47e   :  { %v831_v59 = vadd.f32 %v830_v53, %v774_v57  ;;  %v1152_v60 = vpop.f32.mrb[17].mxu1 }
 0x47f   :  { %v777_v61 = vpop.f32.mrb[18].mxu1 }
 0x480   :  { %v842_v62 = vadd.f32 %v1009_v58, %v831_v59  ;;  %v834_v63 = vadd.f32 %v833_v55, %v777_v61  ;;  %v1153_v1 = vpop.f32.mrb[19].mxu1 }
 0x482   :  { %v844_v0 = vmax.f32 %v842_v62, 0.0  ;;  %v843_v2 = vadd.f32 %v1009_v58, %v834_v63 }
 0x484   :  { %v846_v3 = vsel %vm223_vm2, %v844_v0, 0.0  ;;  %v845_v4 = vmax.f32 %v843_v2, 0.0 }
 0x485   :  { %v847_v5 = vrot.slane %v846_v3, 4 }
 0x486   :  { %v853_v6 = vsel %vm223_vm2, %v845_v4, 0.0 }
 0x487   :  { %v848_v7 = vadd.f32 %v847_v5, %v846_v3  ;;  %v854_v8 = vrot.slane %v853_v6, 4 }
 0x489   :  { %v849_v9 = vrot.slane %v848_v7, 2  ;;  %v855_v10 = vadd.f32 %v854_v8, %v853_v6 }
 0x48b   :  { %v850_v11 = vadd.f32 %v849_v9, %v848_v7  ;;  %v856_v12 = vrot.slane %v855_v10, 2 }
 0x48d   :  { %v851_v13 = vrot.slane %v850_v11, 1  ;;  %v857_v14 = vadd.f32 %v856_v12, %v855_v10 }
 0x48f   :  { %v852_v15 = vadd.f32 %v851_v13, %v850_v11  ;;  %v858_v16 = vrot.slane %v857_v14, 1 }
 0x491   :  { %v860_v17 = vmul.f32 0.125, %v852_v15  ;;  %v859_v18 = vadd.f32 %v858_v16, %v857_v14 }
 0x493   :  { %v866_v19 = vpack.c.bf16 %v860_v17, %v860_v17  ;;  %v861_v20 = vmul.f32 0.125, %v859_v18 }
 0x495   :  { %v867_v21 = vpack.c.bf16 %v861_v20, %v861_v20  ;;  %v875_v22 = vunpack.c.l.b16 %v866_v19 }
 0x497   :  { %v876_v23 = vunpack.c.l.b16 %v867_v21 }
 0x499   :  { %v878_v24 = vsel %vm877_vm3, %v876_v23, %v875_v22 }
 0x49a   :  { %v879_v25 = vpack.c.b16 %v878_v24, %v878_v24 }
 0x49c   :  { %1167 = vmatmul.mubr.msk.bf16.vlgmr.msra.gmra.mrb[20].mxu1 %vm223_vm2, %v879_v25 }
 0x56f   :  { %v929_v27 = vpop.f32.mrb[20].mxu1 }
 0x570   :  { %v930_v28 = vadd.f32 %v1010_v26, %v929_v27  ;;  %v1168_v29 = vpop.f32.mrb[21].mxu1 }
 0x571   :  { %v932_v30 = vpop.f32.mrb[22].mxu1 }
 0x572   :  { %v1169_v31 = vpop.f32.mrb[23].mxu1  ;;  %936 = vst.msk [vmem:[#allocation2] sm:$0x3] %vm935_vm4, %v930_v28 }
 0x573   :  { %1221 = shalt.err (!%p1218_p4)
}
 0x574   :  { %s1222_s3 = scalar_lea.hbm %s1483_s4, 32 }
 0x575   :  { %p1223_p5 = scmp.ne.s32.totalorder %s1483_s4, %s1222_s3  ;;  %p1226_p6 = scmp.lt.u32.totalorder %s1222_s3, %s1483_s4 }
 0x577   :  { %p1228_p7 = pnand %p1226_p6, %p1223_p5 }
 0x579   :  { %1231 = shalt.err (!%p1228_p7)
}
 0x57a   :  { %946 = dma.vmem_to_hbm [thread:$0]  %s944_s0, 32, %s1483_s4, [#allocation3]  }
 0x57b   :  { %1232 = dma.done.wait [#allocation3], 32  }
 0x57c   :  { %1233 = vsyncadd [#allocation3], 4294967264 }
 0x57d   :  { %950 = vsyncpa [#allocation3], 1 }

</bundles_post_ra>
